<compile_context>
chip_gen: v6e
topology: v6e:2x2x1
jax: 0.10.0
libtpu: 0.0.40
codegen_flags: <defaults>
</compile_context>

<pallas_src>
import functools
import math

import jax
import jax.numpy as jnp
from jax.experimental import pallas as pl
from jax.experimental.pallas import tpu as pltpu


def _round_up(v: int, m: int) -> int:
    return (v + m - 1) // m * m


def _padded_bytes(rows: int, cols: int, itemsize: int) -> int:
    """(8,128)-tile-padded VMEM footprint of one 2-D slab."""
    return _round_up(max(rows, 1), 8) * _round_up(max(cols, 1), 128) * itemsize


def _vmem_capacity_bytes() -> int:
    """Per-core VMEM capacity; conservative 64 MiB fallback (v7x-sized)."""
    try:
        info = pltpu.get_tpu_info()
        cap = getattr(info, "vmem_capacity_bytes", None)
        if cap:
            return int(cap)
    except Exception:
        pass
    return 64 * 1024 * 1024


def _cov_kernel(x_ref, o_ref, *, inv: float, mm_dtype, scale_lhs: bool):
    # x_ref block: (BB, N, D); o_ref block: (BB, N, N)
    xf = x_ref[...].astype(jnp.float32)
    mean = jnp.mean(xf, axis=-1, keepdims=True)          # (BB, N, 1) f32
    xm = xf - mean                                       # centered, f32
    if scale_lhs:
        # N > D: fold 1/(D-1) into the smaller (N*D) operand, in f32 before
        # any narrowing cast, instead of a VPU pass over the (N*N) cov.
        lhs = (xm * inv).astype(mm_dtype)
        rhs = xm.astype(mm_dtype)
        cov = jnp.einsum("bnd,bmd->bnm", lhs, rhs,
                         preferred_element_type=jnp.float32)
    else:
        xmc = xm.astype(mm_dtype)
        # Batched contraction over D; contraction dim is minor on both
        # operands, so no explicit transpose feeds the MXU.
        cov = jnp.einsum("bnd,bmd->bnm", xmc, xmc,
                         preferred_element_type=jnp.float32)
        cov = cov * inv                                  # fuses with the cast
    o_ref[...] = cov.astype(o_ref.dtype)


def _pick_bb(b: int, n: int, d: int, in_itemsize: int, mm_itemsize: int,
             out_itemsize: int, scale_lhs: bool, vmem_cap: int) -> int:
    """Batch slabs per grid step, sized from the *full* VMEM working set."""
    per_slab = (
        2 * _padded_bytes(n, d, in_itemsize)         # double-buffered input block
        + 2 * _padded_bytes(n, n, out_itemsize)      # double-buffered output block
        + _padded_bytes(n, d, 4)                     # f32 centered copy (xf/xm)
        + (2 if scale_lhs else 1) * _padded_bytes(n, d, mm_itemsize)  # MXU operand(s)
        + _padded_bytes(n, n, 4)                     # f32 cov before output cast
    )
    budget = int(0.45 * vmem_cap)                    # working-set target
    bb = max(1, budget // per_slab)
    bb = min(bb, b, 2048)
    # Keep >= ~4 grid steps: v7x megacore needs >=2, and the pipeline needs
    # multiple steps to hide DMA at all.
    bb = min(bb, max(1, -(-b // 4)))
    # Prefer a divisor of b (no ragged last block) if one exists without
    # shrinking the slab by more than ~2x; otherwise keep the ragged tail.
    largest_div = 1
    for cand in range(bb, 0, -1):
        if b % cand == 0:
            largest_div = cand
            break
    if largest_div >= max(1, bb // 2):
        bb = largest_div
    return int(max(1, bb))


def covariance(x: jax.Array, *, allow_bf16_matmul: bool = False,
               block_batch: int | None = None) -> jax.Array:
    """Pallas equivalent of torch covariance(x): (..., N, D) -> (..., N, N)."""
    *batch, n, d = x.shape
    b = int(math.prod(batch)) if batch else 1
    x_flat = x.reshape(b, n, d)

    # Unbiased normalization 1/(D-1); D == 1 mirrors torch's 0/0 -> NaN.
    inv = 1.0 / (d - 1) if d > 1 else float("nan")
    if x.dtype == jnp.bfloat16 or (allow_bf16_matmul and x.dtype == jnp.float32):
        mm_dtype = jnp.bfloat16   # bf16 MXU operands, f32 accumulation
    else:
        mm_dtype = jnp.float32
    scale_lhs = (n > d) and (d > 1)

    vmem_cap = _vmem_capacity_bytes()
    in_item = jnp.dtype(x.dtype).itemsize
    out_item = in_item
    mm_item = jnp.dtype(mm_dtype).itemsize

    if block_batch is None:
        bb = _pick_bb(b, n, d, in_item, mm_item, out_item, scale_lhs, vmem_cap)
    else:
        bb = int(block_batch)
    bb = max(1, min(bb, b))
    g = pl.cdiv(b, bb)   # ragged last block is masked by Pallas; no host pad/slice

    kernel = functools.partial(_cov_kernel, inv=inv, mm_dtype=mm_dtype,
                               scale_lhs=scale_lhs)
    out_flat = pl.pallas_call(
        kernel,
        out_shape=jax.ShapeDtypeStruct((b, n, n), x.dtype),
        grid_spec=pltpu.PrefetchScalarGridSpec(
            num_scalar_prefetch=0,
            grid=(g,),
            in_specs=[pl.BlockSpec((bb, n, d), lambda i: (i, 0, 0))],
            out_specs=pl.BlockSpec((bb, n, n), lambda i: (i, 0, 0)),
        ),
        compiler_params=pltpu.CompilerParams(
            dimension_semantics=("parallel",),
            vmem_limit_bytes=int(0.70 * vmem_cap),
        ),
    )(x_flat)

    return out_flat.reshape(*batch, n, n)


def _reference_cov(x: jax.Array) -> jax.Array:
    xm = x - jnp.mean(x, axis=-1, keepdims=True)
    return jnp.matmul(xm, jnp.swapaxes(xm, -1, -2)) / (x.shape[-1] - 1)


if __name__ == "__main__":
    key = jax.random.PRNGKey(0)
    k1, k2, k3 = jax.random.split(key, 3)

    # Main case: batch=2, heads=4, rows N=16, features D=32 (f32).
    x = jax.random.normal(k1, (2, 4, 16, 32), dtype=jnp.float32)
    out = covariance(x)
    jax.block_until_ready(out)
    ref = _reference_cov(x)
    assert out.shape == (2, 4, 16, 16), out.shape
    assert jnp.allclose(out, ref, atol=1e-5, rtol=1e-5), \
        float(jnp.max(jnp.abs(out - ref)))

    # Ragged-last-block path (b=5 with forced bb=2): kept rows must be exact.
    x2 = jax.random.normal(k2, (5, 16, 32), dtype=jnp.float32)
    out2 = covariance(x2, block_batch=2)
    jax.block_until_ready(out2)
    ref2 = _reference_cov(x2)
    assert jnp.allclose(out2, ref2, atol=1e-5, rtol=1e-5), \
        float(jnp.max(jnp.abs(out2 - ref2)))

    # N > D path (1/(D-1) folded into one MXU operand).
    x3 = jax.random.normal(k3, (3, 24, 8), dtype=jnp.float32)
    out3 = covariance(x3)
    jax.block_until_ready(out3)
    ref3 = _reference_cov(x3)
    assert jnp.allclose(out3, ref3, atol=1e-5, rtol=1e-5), \
        float(jnp.max(jnp.abs(out3 - ref3)))

    # bf16 path: centered in f32, bf16 MXU operands, f32 accumulation.
    # (Rounds centered values to bf16 before the matmul, so compared loosely.)
    xb = x.astype(jnp.bfloat16)
    outb = covariance(xb)
    jax.block_until_ready(outb)
    refb = _reference_cov(xb.astype(jnp.float32))
    assert jnp.allclose(outb.astype(jnp.float32), refb, atol=5e-2, rtol=5e-2), \
        float(jnp.max(jnp.abs(outb.astype(jnp.float32) - refb)))

    print("KERNEL_OK")
</pallas_src>

<mosaic_0001>
module attributes {stable_mosaic.version = 11 : i64} {
  func.func @_cov_kernel(%arg0: i32, %arg1: memref<2x16x32xf32, #tpu.memory_space<vmem>>, %arg2: memref<2x16x16xf32, #tpu.memory_space<vmem>>) attributes {dimension_semantics = [#tpu.dimension_semantics<parallel>], iteration_bounds = array<i64: 4>, scalar_prefetch = 0 : i64, scratch_operands = 0 : i64, tpu.core_type = #tpu.core_type<tc>, window_params = [{transform_indices = @transform_0, window_bounds = array<i64: 2, 16, 32>}, {transform_indices = @transform_1, window_bounds = array<i64: 2, 16, 16>}]} {
    %c0 = arith.constant 0 : index
    %c0_0 = arith.constant 0 : index
    %c0_1 = arith.constant 0 : index
    %0 = vector.load %arg1[%c0, %c0_0, %c0_1] : memref<2x16x32xf32, #tpu.memory_space<vmem>>, vector<2x16x32xf32>
    %cst = arith.constant dense<0.000000e+00> : vector<2x16xf32>
    %1 = vector.multi_reduction <add>, %0, %cst [2] : vector<2x16x32xf32> to vector<2x16xf32>
    %2 = vector.shape_cast %1 : vector<2x16xf32> to vector<2x16x1xf32>
    %cst_2 = arith.constant 3.200000e+01 : f32
    %3 = vector.broadcast %cst_2 : f32 to vector<2x16x1xf32>
    %4 = arith.divf %2, %3 : vector<2x16x1xf32>
    %5 = vector.broadcast %4 : vector<2x16x1xf32> to vector<2x16x32xf32>
    %6 = arith.subf %0, %5 : vector<2x16x32xf32>
    "tpu.trace_start"() <{level = 10 : i32, message = "bnd,bmd->bnm"}> : () -> ()
    %cst_3 = arith.constant dense<0.000000e+00> : vector<2x16x16xf32>
    %7 = tpu.matmul %6, %6, %cst_3 {dimension_numbers = #tpu.dot_dimension_numbers<[2], [2], [1], [1], [0, 0, 0, 1, 1, 1], [0], [0]>} : vector<2x16x32xf32>, vector<2x16x32xf32>, vector<2x16x16xf32> -> vector<2x16x16xf32>
    "tpu.trace_stop"() : () -> ()
    %cst_4 = arith.constant 0.0322580636 : f32
    %8 = vector.broadcast %cst_4 : f32 to vector<2x16x16xf32>
    %9 = arith.mulf %7, %8 : vector<2x16x16xf32>
    %c0_5 = arith.constant 0 : index
    %c0_6 = arith.constant 0 : index
    %c0_7 = arith.constant 0 : index
    %10 = vector.load %arg2[%c0_5, %c0_6, %c0_7] : memref<2x16x16xf32, #tpu.memory_space<vmem>>, vector<2x16x16xf32>
    tpu.vector_store %arg2[%c0_5, %c0_6, %c0_7], %9 {strides = array<i32>} : memref<2x16x16xf32, #tpu.memory_space<vmem>>, vector<2x16x16xf32>,
    return
  }
  func.func @transform_0(%arg0: i32) -> (i32, i32, i32) {
    %c0_i32 = arith.constant 0 : i32
    %c0_i32_0 = arith.constant 0 : i32
    %c0_i32_1 = arith.constant 0 : i32
    return %arg0, %c0_i32, %c0_i32_0 : i32, i32, i32
  }
  func.func @transform_1(%arg0: i32) -> (i32, i32, i32) {
    %c0_i32 = arith.constant 0 : i32
    %c0_i32_0 = arith.constant 0 : i32
    %c0_i32_1 = arith.constant 0 : i32
    return %arg0, %c0_i32, %c0_i32_0 : i32, i32, i32
  }
}

</mosaic_0001>

<bundles_post_ra>
// kernel: tpu_custom_call.1
= control target key start
LH: loop header
LB: loop body
LE: loop exit
PB: predicated region body
PF: predicated region fallthrough
CT: control target
= control target key end

     0   :  { %6 = vsyncpa [#allocation3], 0  ;;  %s809_s0 = inlined_call_operand.hbm [shape: f32[8,16,32], index: 0, kind: input, shape index: {}]   ;;  %s810_s1 = inlined_call_operand.hbm [shape: f32[8,16,16], index: 1, kind: output, shape index: {}]  }
   0x1   :  { %8 = vsyncpa [#allocation3 + $0x1], 0 }
   0x2   :  { %9 = vsyncpa [#allocation4], 0 }
   0x3   :  { %11 = vsyncpa [#allocation4 + $0x1], 0  ;;  %s633_s6 = smov 0   ;;  %s635_s7 = smov 0  }
   0x4   :  { %s637_s8 = smov 0   ;;  %s639_s9 = smov 0  }
   0x5 LB: > { %s654_s10 = sadd.s32 4294967295, %s615_s9   ;;  %s423_s11 = sadd.s32 4294967294, %s615_s9   ;;  %s615_s9 = sphi %s639_s9, %s824_s9   ;;  %s611_s8 = sphi %s637_s8, %s823_s8   ;;  %s607_s7 = sphi %s635_s7, %s822_s7   ;;  %s603_s6 = sphi %s633_s6, %s821_s6  }
   0x6   : > { %s658_s12 = sadd.s32 1, %s615_s9   ;;  %s24_s13 = sadd.s32 1, %s611_s8 }
   0x7   : > { %s21_s14 = ssub.s32 %s615_s9, %s658_s12  ;;  %p31_p0 = scmp.ne.s32.totalorder %s611_s8, %s607_s7 }
   0x8   : > { %p22_p1 = scmp.eq.s32.totalorder %s21_s14, 0  ;;  %p32_p2 = scmp.eq.s32.totalorder %s615_s9, 0 }
   0x9   : > { %p37_p3 = scmp.ne.s32.totalorder %s607_s7, %s603_s6  ;;  %p38_p4 = scmp.eq.s32.totalorder %s654_s10, 0 }
   0xa   : > { %s670_s15 = scalar_select %p22_p1, %s611_s8, %s24_s13  }
   0xb   : > { %p672_p5 = por %p32_p2, %p31_p0  ;;  %p676_p6 = por %p38_p4, %p37_p3 }
   0xc   : > { %p61_p7 = scmp.eq.s32.totalorder %s654_s10, 3  ;;  %p67_p8 = scmp.eq.s32.totalorder %s423_s11, 3 }
   0xd   : > { %s814_s17 = scalar_select %p676_p6, 1, 0 }
   0xe   : > { %p485_p9 = scmp.lt.s32.totalorder %s615_s9, 4  ;;  %p682_p10 = por %p61_p7, %p31_p0 }
   0xf   : > { %p686_p11 = por %p67_p8, %p37_p3  ;;  %s87_s20 = sand.u32 1, %s611_s8  }
  0x10   : > { %s815_s18 = scalar_select %p682_p10, 1, 0 }
  0x11   : > { %s816_s19 = scalar_select %p686_p11, 1, 0 }
  0x12   : > { %s448_s21 = sshll.u32 %s615_s9, 9  ;;  %s426_s22 = sshll.u32 %s87_s20, 5 }
  0x13   : > { %s695_s25 = scalar_lea.hbm %s809_s0, %s448_s21  ;;  %s91_s26 = scalar_lea.vmem [#allocation2], %s426_s22 }
  0x14   : > { %s99_s27 = sshll.u32 %s91_s26, 4  ;;  %p699_p12 = pnand %p485_p9, %p672_p5  ;;  %s703_s27 = int_to_ptr.vmem [resolvable:$true] %s99_s27 }
  0x15   : > { %s705_s29 = scalar_lea.sflag [#allocation3], %s87_s20  ;;  %s523_s30 = scalar_lea.hbm %s695_s25, 512 }
  0x16   : > { %p524_p13 = scmp.ne.s32.totalorder %s695_s25, %s523_s30  ;;  %p525_p0 = pneg %p699_p12 }
  0x17   : > { %s528_s4 = scalar_lea.hbm %s809_s0, 2048  ;;  %p529_p3 = scmp.lt.s32.totalorder %s695_s25, %s809_s0 }
  0x18   : > { %p526_p1 = pnand %p525_p0, %p524_p13  ;;  %p530_p4 = scmp.lt.s32.totalorder %s528_s4, %s523_s30 }
  0x1a   : > { %p527_p2 = pneg %p526_p1  ;;  %p531_p5 = por %p530_p4, %p529_p3 }
  0x1c   : > { %p532_p7 = pnand %p531_p5, %p527_p2 }
  0x1e   : > { %535 = shalt.err (!%p532_p7)
}
  0x1f   : > { %s536_s13 = scalar_lea.vmem %s703_s27, 512  ;;  %s617_s14 = smov [#allocation2]  }
  0x20   : > { %p537_p8 = scmp.ne.s32.totalorder %s703_s27, %s536_s13  ;;  %s541_s16 = sshll.u32 %s617_s14, 4  ;;  %s542_s16 = int_to_ptr.vmem [resolvable:$false] %s541_s16 }
  0x21   : > { %s543_s20 = scalar_lea.vmem %s542_s16, 1024  ;;  %p544_p1 = scmp.lt.s32.totalorder %s703_s27, %s542_s16 }
  0x22   : > { %p539_p9 = pnand %p537_p8, %p525_p0  ;;  %p545_p11 = scmp.lt.s32.totalorder %s543_s20, %s536_s13 }
  0x24   : > { %p540_p13 = pneg %p539_p9  ;;  %p546_p10 = por %p545_p11, %p544_p1 }
  0x26   : > { %p547_p6 = pnand %p546_p10, %p540_p13 }
  0x28   : > { %550 = shalt.err (!%p547_p6)
}
  0x29   : > { %s618_s21 = smov 128   ;;  %s619_s22 = smov 8  }
  0x2a   : > { %480 = dma.hbm_to_vmem [thread:$0]  (!%p699_p12), %s695_s25, 512, %s703_s27, %s705_s29, %s618_s21, %s618_s21, %s619_s22  }
  0x2b   : > { %p430_p0 = scmp.ge.s32.totalorder %s615_s9, 1  ;;  %p107_p2 = scmp.lt.s32.totalorder %s615_s9, 5 }
  0x2d   : > { %p108_p3 = pnand %p430_p0, %p107_p2 }
  0x2e   : > { %s729_s23 = sand.u32 (!%p108_p3), 1, %s607_s7   ;;  %p818_p6 = scmp.ne.s32.totalorder (!%p108_p3), %s814_s17, 0 }
  0x2f   : > { %111 = sbr.rel (%p108_p3) target bundleno = 421 (0x1a5), region = 24  ;;  %s431_s24 = sshll.u32 (!%p108_p3), %s729_s23, 5 }
  0x30   : > { %s114_s26 = scalar_lea.sflag (!%p108_p3), [#allocation3], %s729_s23  ;;  %s117_s30 = scalar_lea.vmem (!%p108_p3), [#allocation2], %s431_s24 }
  0x34   : > { %594 = dma.done.wait (%p818_p6), %s114_s26, 512  }
  0x35   : > { %596 = vsyncadd (%p818_p6), %s114_s26, 4294966784  ;;  %vm142_vm0 = vcmask 261120   ;;  %v139_v0 = vld [vmem:[%s117_s30 + $0x8] sm:$0xff]  ;;  %v141_v1 = vld [vmem:[%s117_s30 + $0x18] sm:$0xff]  ;;  %vm330_vm1 = vcmask 130048   ;;  %s135_s17 = scalar_lea.vmem [#allocation5], %s431_s24 }
  0x36   : > { %v138_v2 = vld [vmem:[%s117_s30] sm:$0xff]  ;;  %v146_v3 = vsel %vm142_vm0, %v139_v0, 0.0  ;;  %v140_v5 = vld [vmem:[%s117_s30 + $0x10] sm:$0xff]  ;;  %v152_v6 = vsel %vm142_vm0, %v141_v1, 0.0  ;;  %s350_s25 = sshll.u32 %s135_s17, 4  ;;  %s450_s27 = sshll.u32 %s654_s10, 9  ;;  %s759_s25 = int_to_ptr.vmem [resolvable:$true] %s350_s25 }
  0x37   : > { %v143_v4 = vsel %vm142_vm0, %v138_v2, 0.0  ;;  %147 = vadd.xlane.f32.xlu0 %v146_v3  ;;  %v149_v7 = vsel %vm142_vm0, %v140_v5, 0.0  ;;  %s765_s2 = scalar_lea.hbm %s810_s1, %s450_s27  ;;  %s336_s10 = scalar_lea.sflag [#allocation4], %s729_s23 }
  0x38   : > { %144 = vadd.xlane.f32.xlu1 %v143_v4  ;;  %s551_s3 = scalar_lea.vmem %s759_s25, 512  ;;  %p819_p11 = scmp.ne.s32.totalorder %s815_s18, 0 }
  0x39   : > { %p552_p10 = scmp.ne.s32.totalorder %s759_s25, %s551_s3  ;;  %s620_s4 = smov [#allocation5]  }
  0x3a   : > { %s555_s5 = sshll.u32 %s620_s4, 4  ;;  %s556_s5 = int_to_ptr.vmem [resolvable:$false] %s555_s5 }
  0x3b   : > { %153 = vadd.xlane.f32.xlu0 %v152_v6  ;;  %p553_p12 = pnand %p552_p10, %p819_p11  ;;  %s557_s11 = scalar_lea.vmem %s556_s5, 1024 }
  0x3c   : > { %150 = vadd.xlane.f32.xlu1 %v149_v7  ;;  %p558_p5 = scmp.lt.s32.totalorder %s759_s25, %s556_s5  ;;  %p559_p7 = scmp.lt.s32.totalorder %s557_s11, %s551_s3 }
  0x3d   : > { %p554_p4 = pneg %p553_p12 }
  0x3e   : > { %p560_p8 = por %p559_p7, %p558_p5 }
  0x40   : > { %p561_p9 = pnand %p560_p8, %p554_p4 }
  0xc0   : > { %v148_v8 = vpop.xlane.xlu0 %147 }
  0xc1   : > { %v145_v9 = vpop.xlane.xlu1 %144  ;;  %v157_v10 = vmul.f32 0.03125, %v148_v8 }
  0xc2   : > { %v156_v11 = vmul.f32 0.03125, %v145_v9 }
  0xc3   : > { %v161_v12 = vsub.f32 %v139_v0, %v157_v10 }
  0xc4   : > { %v160_v13 = vsub.f32 %v138_v2, %v156_v11  ;;  %v154_v14 = vpop.xlane.xlu0 %153 }
  0xc5   : > { %v151_v15 = vpop.xlane.xlu1 %150  ;;  %v159_v16 = vmul.f32 0.03125, %v154_v14  ;;  %459 = vmatprep.subr.msk.mxu0 %vm142_vm0, %v161_v12 }
  0xc6   : > { %v158_v17 = vmul.f32 0.03125, %v151_v15  ;;  %463 = vmatprep.mubr.msk.f32.mxu0 %vm142_vm0, %v160_v13  ;;  %460 = vmatpush3.xpose.msk.msra.mxu0 %vm142_vm0, %v161_v12 }
  0xc7   : > { %v163_v18 = vsub.f32 %v141_v1, %v159_v16  ;;  %461 = vmatprep.subr.msk.mxu0 %vm142_vm0, %v160_v13 }
  0xc8   : > { %v162_v19 = vsub.f32 %v140_v5, %v158_v17 }
  0xc9   : > { %466 = vmatprep.subr.msk.mxu1 %vm142_vm0, %v163_v18 }
  0xca   : > { %470 = vmatprep.mubr.msk.f32.mxu1 %vm142_vm0, %v162_v19  ;;  %462 = vmatpush3.xpose.msk.msra.mxu0 %vm142_vm0, %v160_v13 }
  0xcb   : > { %467 = vmatpush3.xpose.msk.msra.mxu1 %vm142_vm0, %v163_v18 }
  0xcc   : > { %468 = vmatprep.subr.msk.mxu1 %vm142_vm0, %v162_v19 }
  0xcd   : > { %464 = vmatmul.mubr.msk.f32.vlgmr.msra.gmra.mxu0 %vm142_vm0, %v161_v12 }
  0xcf   : > { %469 = vmatpush3.xpose.msk.msra.mxu1 %vm142_vm0, %v162_v19 }
  0xd2   : > { %471 = vmatmul.mubr.msk.f32.vlgmr.msra.gmra.mxu1 %vm142_vm0, %v163_v18 }
 0x18d   : > { %v465_v20 = vpop.f32.mrf.mxu0 }
 0x18e   : > { %v327_v21 = vmul.f32 0.032258064, %v465_v20 }
 0x18f   : > { %v236_v22 = vpop.f32.mrf.mxu0 }
 0x190   : > { %332 = vst.msk [vmem:[%s135_s17 + $0x8] sm:$0xff] %vm330_vm1, %v327_v21  ;;  %v326_v23 = vmul.f32 0.032258064, %v236_v22 }
 0x192   : > { %v472_v24 = vpop.f32.mrf.mxu1  ;;  %331 = vst.msk [vmem:[%s135_s17] sm:$0xff] %vm330_vm1, %v326_v23 }
 0x193   : > { %v329_v25 = vmul.f32 0.032258064, %v472_v24 }
 0x194   : > { %v317_v26 = vpop.f32.mrf.mxu1 }
 0x195   : > { %334 = vst.msk [vmem:[%s135_s17 + $0x18] sm:$0xff] %vm330_vm1, %v329_v25  ;;  %v328_v27 = vmul.f32 0.032258064, %v317_v26 }
 0x197   : > { %333 = vst.msk [vmem:[%s135_s17 + $0x10] sm:$0xff] %vm330_vm1, %v328_v27 }
 0x198   : > { %564 = shalt.err (!%p561_p9)
}
 0x199   : > { %s565_s13 = scalar_lea.hbm %s765_s2, 512  ;;  %s569_s20 = scalar_lea.hbm %s810_s1, 2048 }
 0x19a   : > { %p566_p13 = scmp.ne.s32.totalorder %s765_s2, %s565_s13  ;;  %p570_p2 = scmp.lt.s32.totalorder %s765_s2, %s810_s1 }
 0x19b   : > { %p571_p3 = scmp.lt.s32.totalorder %s569_s20, %s565_s13 }
 0x19c   : > { %p567_p1 = pnand %p566_p13, %p819_p11 }
 0x19d   : > { %p572_p6 = por %p571_p3, %p570_p2 }
 0x19e   : > { %p568_p0 = pneg %p567_p1 }
 0x1a0   : > { %p573_p10 = pnand %p572_p6, %p568_p0 }
 0x1a2   : > { %576 = shalt.err (!%p573_p10)
}
 0x1a3   : > { %s621_s24 = smov 128   ;;  %s622_s26 = smov 8  }
 0x1a4   : > { %475 = dma.vmem_to_hbm [thread:$0]  (%p819_p11), %s759_s25, 512, %s765_s2, %s336_s10, %s621_s24, %s621_s24, %s622_s26  }
 0x1a5 PF: > { %p486_p12 = scmp.ge.s32.totalorder %s615_s9, 2  ;;  %s365_s30 = sand.u32 1, %s603_s6  }
 0x1a6   : > { %p820_p4 = scmp.ne.s32.totalorder %s816_s19, 0  ;;  %s366_s17 = scalar_lea.sflag [#allocation4], %s365_s30 }
 0x1a8   : > { %p482_p5 = pnand %p486_p12, %p820_p4 }
 0x1aa   : > { %p483_p7 = pneg %p482_p5 }
 0x1ac   : > { %598 = dma.done.wait (%p483_p7), %s366_s17, 512  }
 0x1ad   : > { %600 = vsyncadd (%p483_p7), %s366_s17, 4294966784  ;;  %p14_p8 = scmp.ge.s32.totalorder %s658_s12, 6   ;;  %s821_s6 = smov %s607_s7 }
 0x1ae   : > { %s822_s7 = smov %s611_s8  ;;  %s823_s8 = smov %s670_s15 }
 0x1af   : > { %s824_s9 = smov %s658_s12  ;;  %16 = sbr.rel (!%p14_p8) target bundleno = 5 (0x5), region = 69 }
 0x1b4   :  { %371 = vsyncpa [#allocation3], 1 }
 0x1b5   :  { %373 = vsyncpa [#allocation3 + $0x1], 1 }
 0x1b6   :  { %374 = vsyncpa [#allocation4], 1 }
 0x1b7   :  { %376 = vsyncpa [#allocation4 + $0x1], 1 }

</bundles_post_ra>
